<compile_context>
chip_gen: v5e
topology: v5e:2x2
jax: 0.10.0
libtpu: 0.0.40
codegen_flags: <defaults>
</compile_context>

<pallas_src>
import functools

import jax
import jax.numpy as jnp
from jax.experimental import pallas as pl
from jax.experimental.pallas import tpu as pltpu


_LANES = 128
_SUBLANES = 8            # f32 sublanes per vreg (accumulation is always f32)
_ROW_GRANULE = 32        # tile_r multiple of 32 rows: packed for f32/bf16/int8
_FAST_PATH_BYTES = 256 * 1024   # below this, XLA's fused MSE beats a pallas_call


def _cdiv(a, b):
    return -(-a // b)


def _round_up(a, b):
    return _cdiv(a, b) * b


def _round_down(a, b):
    return (a // b) * b


@functools.lru_cache(maxsize=1)
def _block_byte_budget():
    """Per-input VMEM block budget (bytes), generation aware.

    ~2 MiB amortizes the ~0.35us/step grid overhead to ~10% of a v6e HBM
    stream; v7x's ~2.3x faster per-TC HBM wants ~4 MiB blocks.
    """
    try:
        kind = jax.devices()[0].device_kind.lower()
    except Exception:
        kind = ""
    if "v7" in kind or "7x" in kind:
        return 4 * 1024 * 1024
    return 2 * 1024 * 1024


@functools.lru_cache(maxsize=1)
def _vmem_limit_bytes():
    # 2 MiB blocks: 2 inputs x 2 buffers (8 MiB) + f32 temps -> well under 32 MiB.
    # 4 MiB blocks (v7x): 16 MiB buffers + temps -> 48 MiB scoped (physical 64 MiB).
    return 48 * 1024 * 1024 if _block_byte_budget() > 2 * 1024 * 1024 else 32 * 1024 * 1024


def _choose_tile_rows(rows, max_tile_r):
    """Row-tile size: big (HBM-granularity) and 2-way splittable, never tiny."""
    if rows <= 2 * max_tile_r:
        # Two roughly equal tiles so the 2-part "parallel" axis shards the
        # stream evenly across TensorCores on v7x.
        t = _round_up(_cdiv(rows, 2), _ROW_GRANULE)
    else:
        t = max_tile_r
    return max(_ROW_GRANULE, t)


def _mse_partial_kernel(p_ref, t_ref, o_ref, *, rows, tile_r, tiles_per_part,
                        inv_count, needs_mask):
    """Accumulate sum((p - t)^2) / count into a lane-dense (1, 8, 128) partial."""
    r = pl.program_id(1)

    # o_ref is resident across the "arbitrary" row-tile axis (its index map
    # only depends on the part axis) -> init on the first tile of this part.
    @pl.when(r == 0)
    def _():
        o_ref[...] = jnp.zeros_like(o_ref)

    d = p_ref[...].astype(jnp.float32) - t_ref[...].astype(jnp.float32)
    sq = d * d

    if needs_mask:
        # Ragged last tile / clamped phantom tile: zero rows beyond the true
        # row count (Pallas leaves the out-of-bounds part of the VMEM buffer
        # undefined, and phantom iterations re-read an already-counted tile).
        base = (pl.program_id(0) * tiles_per_part + r) * tile_r
        row_ids = base + jax.lax.broadcasted_iota(jnp.int32, (tile_r, _LANES), 0)
        sq = jnp.where(row_ids < rows, sq, 0.0)

    # Reduce groups of 8 sublanes into the (1, 8, 128) vreg-shaped partial.
    # The reshape keeps the (8, 128) minor tile intact -> pure VPU vreg adds.
    o_ref[...] += jnp.sum(
        sq.reshape(1, tile_r // _SUBLANES, _SUBLANES, _LANES), axis=1
    )

    # Scale by 1/count in-kernel (free under the DMA-bound pipeline) so the
    # wrapper only needs one tiny cross-lane sum.
    @pl.when(r == tiles_per_part - 1)
    def _():
        o_ref[...] = o_ref[...] * inv_count


def _mse_mean_pallas(prediction, target):
    """mean((prediction - target)^2) for one pair."""
    p = jnp.asarray(prediction)
    t = jnp.asarray(target)
    assert p.shape == t.shape, (p.shape, t.shape)

    count = p.size
    if count == 0:
        # Guard: an empty pair contributes zero loss (documented choice).
        return jnp.float32(0.0)

    itemsize = max(p.dtype.itemsize, t.dtype.itemsize)
    if count * itemsize < _FAST_PATH_BYTES or count % _LANES != 0:
        # Small loss heads: pallas_call dispatch overhead would dominate.
        # Also rare non-lane-aligned sizes (a padded HBM copy would be needed).
        d = p.astype(jnp.float32) - t.astype(jnp.float32)
        return jnp.mean(d * d)

    rows = count // _LANES
    p2 = p.reshape(rows, _LANES)   # free: contiguous row-major view
    t2 = t.reshape(rows, _LANES)

    max_tile_r = max(_ROW_GRANULE,
                     _round_down(_block_byte_budget() // (_LANES * itemsize),
                                 _ROW_GRANULE))
    tile_r = _choose_tile_rows(rows, max_tile_r)
    num_tiles = _cdiv(rows, tile_r)
    # Always split into 2 parts when possible: the "parallel" part axis is
    # what shards the HBM stream across the 2 TensorCores on v7x (it is just
    # a sequential loop on single-TC v5e/v6e).
    num_parts = 2 if num_tiles >= 2 else 1
    tiles_per_part = _cdiv(num_tiles, num_parts)
    # Mask only when the grid over-covers the true row count (ragged last
    # tile and/or a phantom iteration on the second part).
    needs_mask = (num_parts * tiles_per_part * tile_r) != rows

    kernel = functools.partial(
        _mse_partial_kernel,
        rows=rows,
        tile_r=tile_r,
        tiles_per_part=tiles_per_part,
        inv_count=float(1.0 / count),
        needs_mask=needs_mask,
    )

    def in_index_map(c, r, tpp=tiles_per_part, nt=num_tiles):
        g = c * tpp + r
        # Clamp phantom iterations (odd tile count, 2 parts) to the last real
        # tile; the in-kernel mask zeroes their contribution.
        return (jnp.minimum(g, nt - 1), 0)

    in_bytes = count * (p.dtype.itemsize + t.dtype.itemsize)
    out_bytes = num_parts * _SUBLANES * _LANES * 4

    partials = pl.pallas_call(
        kernel,
        out_shape=jax.ShapeDtypeStruct((num_parts, _SUBLANES, _LANES), jnp.float32),
        grid_spec=pltpu.PrefetchScalarGridSpec(
            num_scalar_prefetch=0,
            grid=(num_parts, tiles_per_part),
            in_specs=[
                pl.BlockSpec((tile_r, _LANES), in_index_map),
                pl.BlockSpec((tile_r, _LANES), in_index_map),
            ],
            out_specs=pl.BlockSpec((1, _SUBLANES, _LANES), lambda c, r: (c, 0, 0)),
        ),
        compiler_params=pltpu.CompilerParams(
            dimension_semantics=("parallel", "arbitrary"),
            vmem_limit_bytes=_vmem_limit_bytes(),
        ),
        cost_estimate=pl.CostEstimate(
            flops=3 * count,  # sub, mul, add-accumulate
            transcendentals=0,
            bytes_accessed=in_bytes + out_bytes,
        ),
    )(p2, t2)

    # Single tiny cross-lane/sublane reduce of num_parts * 1024 f32 values
    # (already scaled by 1/count in-kernel).
    return jnp.sum(partials)


def criteria_loss(predictions, targets):
    """Sum of per-pair MSE losses (the Criteria module's forward).

    predictions / targets: lists/tuples of arrays; pair i may have any shape.
    Returns a scalar f32 loss.
    """
    assert isinstance(predictions, (list, tuple))
    assert isinstance(targets, (list, tuple))
    assert len(predictions) == len(targets)

    losses = [_mse_mean_pallas(p, t) for p, t in zip(predictions, targets)]
    return functools.reduce(lambda x, y: x + y, losses)


if __name__ == "__main__":
    key = jax.random.PRNGKey(0)
    keys = jax.random.split(key, 8)

    # Pair 0/1: small NCHW loss heads -> fused-XLA fast path.
    small = (2, 4, 16, 16)
    # Pair 2: larger f32 head whose row count (600) is not tile-aligned
    #         -> Pallas path with a ragged masked last tile + 2-part split.
    big_f32 = (3, 5, 40, 128)
    # Pair 3: bf16 head -> Pallas path streaming bf16 from HBM (f32 math inside).
    big_bf16 = (4, 8, 48, 128)

    predictions = [
        jax.random.normal(keys[0], small, dtype=jnp.float32),
        jax.random.normal(keys[1], small, dtype=jnp.float32),
        jax.random.normal(keys[2], big_f32, dtype=jnp.float32),
        jax.random.normal(keys[3], big_bf16, dtype=jnp.float32).astype(jnp.bfloat16),
    ]
    targets = [
        jax.random.normal(keys[4], small, dtype=jnp.float32),
        jax.random.normal(keys[5], small, dtype=jnp.float32),
        jax.random.normal(keys[6], big_f32, dtype=jnp.float32),
        jax.random.normal(keys[7], big_bf16, dtype=jnp.float32).astype(jnp.bfloat16),
    ]

    loss = criteria_loss(predictions, targets)
    loss = jax.block_until_ready(loss)

    # Silent correctness check against a pure-JAX reference.
    ref = sum(
        jnp.mean((p.astype(jnp.float32) - t.astype(jnp.float32)) ** 2)
        for p, t in zip(predictions, targets)
    )
    assert jnp.allclose(loss, ref, rtol=1e-4, atol=1e-5), (loss, ref)

    print("KERNEL_OK")
</pallas_src>

<mosaic_0001>
module attributes {stable_mosaic.version = 11 : i64} {
  func.func @_mse_partial_kernel(%arg0: i32, %arg1: i32, %arg2: memref<320x128xf32, #tpu.memory_space<vmem>>, %arg3: memref<320x128xf32, #tpu.memory_space<vmem>>, %arg4: memref<1x8x128xf32, #tpu.memory_space<vmem>>) attributes {dimension_semantics = [#tpu.dimension_semantics<parallel>, #tpu.dimension_semantics<arbitrary>], iteration_bounds = array<i64: 2, 1>, scalar_prefetch = 0 : i64, scratch_operands = 0 : i64, tpu.core_type = #tpu.core_type<tc>, window_params = [{transform_indices = @transform_0, window_bounds = array<i64: 320, 128>}, {transform_indices = @transform_1, window_bounds = array<i64: 320, 128>}, {transform_indices = @transform_2, window_bounds = array<i64: 1, 8, 128>}]} {
    %c0_i32 = arith.constant 0 : i32
    %0 = arith.cmpi eq, %arg1, %c0_i32 : i32
    %1 = arith.extui %0 : i1 to i32
    %c0_i32_0 = arith.constant 0 : i32
    %2 = arith.cmpi ne, %1, %c0_i32_0 : i32
    scf.if %2 {
      %cst_13 = arith.constant 0.000000e+00 : f32
      %25 = vector.broadcast %cst_13 : f32 to vector<1x8x128xf32>
      %c0_14 = arith.constant 0 : index
      %c0_15 = arith.constant 0 : index
      %c0_16 = arith.constant 0 : index
      %26 = vector.load %arg4[%c0_14, %c0_15, %c0_16] : memref<1x8x128xf32, #tpu.memory_space<vmem>>, vector<1x8x128xf32>
      tpu.vector_store %arg4[%c0_14, %c0_15, %c0_16], %25 {strides = array<i32>} : memref<1x8x128xf32, #tpu.memory_space<vmem>>, vector<1x8x128xf32>,
    } else {
    }
    %c0 = arith.constant 0 : index
    %c0_1 = arith.constant 0 : index
    %3 = vector.load %arg2[%c0, %c0_1] : memref<320x128xf32, #tpu.memory_space<vmem>>, vector<320x128xf32>
    %c0_2 = arith.constant 0 : index
    %c0_3 = arith.constant 0 : index
    %4 = vector.load %arg3[%c0_2, %c0_3] : memref<320x128xf32, #tpu.memory_space<vmem>>, vector<320x128xf32>
    %5 = arith.subf %3, %4 : vector<320x128xf32>
    %6 = arith.mulf %5, %5 : vector<320x128xf32>
    %c1_i32 = arith.constant 1 : i32
    %7 = arith.muli %arg0, %c1_i32 : i32
    %8 = arith.addi %7, %arg1 : i32
    %c320_i32 = arith.constant 320 : i32
    %9 = arith.muli %8, %c320_i32 : i32
    %10 = tpu.iota {dimensions = array<i32: 0>} : vector<320x128xi32>
    %11 = vector.broadcast %9 : i32 to vector<320x128xi32>
    %12 = arith.addi %11, %10 : vector<320x128xi32>
    %c600_i32 = arith.constant 600 : i32
    %13 = vector.broadcast %c600_i32 : i32 to vector<320x128xi32>
    %14 = arith.cmpi slt, %12, %13 : vector<320x128xi32>
    %cst = arith.constant 0.000000e+00 : f32
    %15 = vector.broadcast %cst : f32 to vector<320x128xf32>
    %16 = arith.select %14, %6, %15 : vector<320x128xi1>, vector<320x128xf32>
    %c0_4 = arith.constant 0 : index
    %c0_5 = arith.constant 0 : index
    %c0_6 = arith.constant 0 : index
    %17 = vector.load %arg4[%c0_4, %c0_5, %c0_6] : memref<1x8x128xf32, #tpu.memory_space<vmem>>, vector<1x8x128xf32>
    %18 = vector.shape_cast %16 : vector<320x128xf32> to vector<1x40x8x128xf32>
    %cst_7 = arith.constant dense<0.000000e+00> : vector<1x8x128xf32>
    %19 = vector.multi_reduction <add>, %18, %cst_7 [1] : vector<1x40x8x128xf32> to vector<1x8x128xf32>
    %20 = arith.addf %17, %19 : vector<1x8x128xf32>
    %c0_8 = arith.constant 0 : index
    %c0_9 = arith.constant 0 : index
    %c0_10 = arith.constant 0 : index
    %21 = vector.load %arg4[%c0_8, %c0_9, %c0_10] : memref<1x8x128xf32, #tpu.memory_space<vmem>>, vector<1x8x128xf32>
    tpu.vector_store %arg4[%c0_8, %c0_9, %c0_10], %20 {strides = array<i32>} : memref<1x8x128xf32, #tpu.memory_space<vmem>>, vector<1x8x128xf32>,
    %c0_i32_11 = arith.constant 0 : i32
    %22 = arith.cmpi eq, %arg1, %c0_i32_11 : i32
    %23 = arith.extui %22 : i1 to i32
    %c0_i32_12 = arith.constant 0 : i32
    %24 = arith.cmpi ne, %23, %c0_i32_12 : i32
    scf.if %24 {
      %c0_13 = arith.constant 0 : index
      %c0_14 = arith.constant 0 : index
      %c0_15 = arith.constant 0 : index
      %25 = vector.load %arg4[%c0_13, %c0_14, %c0_15] : memref<1x8x128xf32, #tpu.memory_space<vmem>>, vector<1x8x128xf32>
      %cst_16 = arith.constant 1.30208336E-5 : f32
      %26 = vector.broadcast %cst_16 : f32 to vector<1x8x128xf32>
      %27 = arith.mulf %25, %26 : vector<1x8x128xf32>
      %c0_17 = arith.constant 0 : index
      %c0_18 = arith.constant 0 : index
      %c0_19 = arith.constant 0 : index
      %28 = vector.load %arg4[%c0_17, %c0_18, %c0_19] : memref<1x8x128xf32, #tpu.memory_space<vmem>>, vector<1x8x128xf32>
      tpu.vector_store %arg4[%c0_17, %c0_18, %c0_19], %27 {strides = array<i32>} : memref<1x8x128xf32, #tpu.memory_space<vmem>>, vector<1x8x128xf32>,
    } else {
    }
    return
  }
  func.func @transform_0(%arg0: i32, %arg1: i32) -> (i32, i32) {
    %c1_i32 = arith.constant 1 : i32
    %0 = arith.muli %arg0, %c1_i32 : i32
    %1 = arith.addi %0, %arg1 : i32
    %c1_i32_0 = arith.constant 1 : i32
    %2 = arith.minsi %1, %c1_i32_0 : i32
    %c0_i32 = arith.constant 0 : i32
    %c0_i32_1 = arith.constant 0 : i32
    return %2, %c0_i32 : i32, i32
  }
  func.func @transform_1(%arg0: i32, %arg1: i32) -> (i32, i32) {
    %c1_i32 = arith.constant 1 : i32
    %0 = arith.muli %arg0, %c1_i32 : i32
    %1 = arith.addi %0, %arg1 : i32
    %c1_i32_0 = arith.constant 1 : i32
    %2 = arith.minsi %1, %c1_i32_0 : i32
    %c0_i32 = arith.constant 0 : i32
    %c0_i32_1 = arith.constant 0 : i32
    return %2, %c0_i32 : i32, i32
  }
  func.func @transform_2(%arg0: i32, %arg1: i32) -> (i32, i32, i32) {
    %c0_i32 = arith.constant 0 : i32
    %c0_i32_0 = arith.constant 0 : i32
    %c0_i32_1 = arith.constant 0 : i32
    return %arg0, %c0_i32, %c0_i32_0 : i32, i32, i32
  }
}

</mosaic_0001>

<bundles_post_ra>
// kernel: tpu_custom_call.1
= control target key start
LH: loop header
LB: loop body
LE: loop exit
PB: predicated region body
PF: predicated region fallthrough
CT: control target
= control target key end

     0   :  { %7 = vsyncpa [#allocation3], 0  ;;  %s1510_s0 = inlined_call_operand.hbm [shape: f32[600,128], index: 0, kind: input, shape index: {}]   ;;  %s1511_s1 = inlined_call_operand.hbm [shape: f32[600,128], index: 1, kind: input, shape index: {}]   ;;  %s1512_s2 = inlined_call_operand.hbm [shape: f32[2,8,128], index: 2, kind: output, shape index: {}]  }
   0x1   :  { %9 = vsyncpa [#allocation3 + $0x1], 0 }
   0x2   :  { %10 = vsyncpa [#allocation6], 0 }
   0x3   :  { %12 = vsyncpa [#allocation6 + $0x1], 0 }
   0x4   :  { %13 = vsyncpa [#allocation4], 0 }
   0x5   :  { %15 = vsyncpa [#allocation4 + $0x1], 0  ;;  %s1082_s9 = smov 0   ;;  %s1084_s10 = smov 0  }
   0x6   :  { %s1086_s11 = smov 0   ;;  %s1088_s12 = smov 0  }
   0x7   :  { %s1090_s13 = smov 0   ;;  %s1092_s14 = smov 0  }
   0x8   :  { %s1094_s15 = smov 0   ;;  %s1096_s16 = smov 0  }
   0x9   :  { %s1098_s17 = smov 0  }
   0xa LB: > { %1515 = sst [smem:[#allocation11_spill]] %s1055_s16  ;;  %s760_s18 = sadd.s32 4294967295, %s1059_s17   ;;  %s1059_s17 = sphi %s1098_s17, %s21_s17   ;;  %s1055_s16 = sphi %s1096_s16, %s1528_s16   ;;  %s1051_s15 = sphi %s1094_s15, %s1527_s15   ;;  %s1047_s14 = sphi %s1092_s14, %s1534_s14   ;;  %s1043_s13 = sphi %s1090_s13, %s1533_s13   ;;  %s1039_s12 = sphi %s1088_s12, %s1532_s12   ;;  %s1035_s11 = sphi %s1086_s11, %s1531_s11   ;;  %s1031_s10 = sphi %s1084_s10, %s1530_s10   ;;  %s1027_s9 = sphi %s1082_s9, %s1529_s9  }
   0xb   : > { %s761_s19 = sadd.s32 4294967294, %s1059_s17   ;;  %s33_s20 = sadd.s32 1, %s1055_s16 }
   0xc   : > { %p38_p0 = scmp.lt.s32.totalorder %s1055_s16, 1  ;;  %p35_p1 = scmp.ge.s32.totalorder %s33_s20, 2 }
   0xd   : > { %s46_s21 = sadd.s32 1, %s1047_s14  ;;  %p53_p2 = scmp.ne.s32.totalorder %s1047_s14, %s1043_s13 }
   0xe   : > { %s1131_s22 = scalar_select %p38_p0, %s1055_s16, 1 }
   0xf   : > { %s1536_s20 = smov (%p35_p1, %s33_s20), 0  ;;  %p54_p3 = scmp.eq.s32.totalorder %s1059_s17, 0 }
  0x10   : > { %1516 = sst [smem:[#allocation12_spill]] %s1536_s20  ;;  %p41_p4 = scmp.lt.s32.totalorder %s1536_s20, 1 }
  0x11   : > { %p59_p5 = scmp.ne.s32.totalorder %s1043_s13, %s1039_s12  ;;  %p1140_p6 = por %p54_p3, %p53_p2 }
  0x12   : > { %p60_p7 = scmp.eq.s32.totalorder %s760_s18, 0  ;;  %s101_s26 = ssub.s32 %s1055_s16, %s1536_s20 }
  0x13   : > { %s42_s24 = scalar_select %p41_p4, %s1536_s20, 1 }
  0x14   : > { %p1145_p8 = por %p60_p7, %p59_p5  ;;  %p102_p9 = scmp.eq.s32.totalorder %s101_s26, 0 }
  0x15   : > { %s43_s27 = ssub.s32 %s1131_s22, %s42_s24  ;;  %s104_s28 = sadd.s32 1, %s1035_s11 }
  0x16   : > { %p44_p10 = scmp.eq.s32.totalorder %s43_s27, 0  ;;  %p114_p11 = scmp.ne.s32.totalorder %s1035_s11, %s1031_s10 }
  0x17   : > { %s1154_s29 = scalar_select %p102_p9, %s1035_s11, %s104_s28  }
  0x18   : > { %s1157_s30 = scalar_select %p44_p10, %s1047_s14, %s46_s21  }
  0x19   : > { %1519 = sst [smem:[#allocation13_spill]] %s1154_s29  ;;  %p115_p12 = scmp.eq.s32.totalorder %s760_s18, 1 }
  0x1a   : > { %1520 = sst [smem:[#allocation14_spill]] %s1157_s30  ;;  %p120_p13 = scmp.ne.s32.totalorder %s1031_s10, %s1027_s9 }
  0x1b   : > { %p121_p0 = scmp.eq.s32.totalorder %s761_s19, 1  ;;  %p1163_p1 = por %p115_p12, %p114_p11 }
  0x1c   : > { %p763_p3 = scmp.ge.s32.totalorder %s1059_s17, 2 }
  0x1d   : > { %p1167_p2 = por %p121_p0, %p120_p13 }
  0x1e   : > { %137 = sbr.rel (%p763_p3) target bundleno = 111 (0x6f), region = 16 }
  0x23   : > { %140 = sbr.rel (!%p1140_p6) target bundleno = 73 (0x49), region = 20  ;;  %s141_s5 = sand.u32 (%p1140_p6), 1, %s1047_s14  }
  0x24   : > { %s149_s6 = smul.u32 (%p1140_p6), 40, %s1131_s22  ;;  %s1181_s21 = scalar_lea.sflag (%p1140_p6), [#allocation3], %s141_s5 }
  0x25   : > { %s782_s7 = smul.u32 (%p1140_p6), 320, %s141_s5 }
  0x26   : > { %s150_s8 = ssub.s32 (%p1140_p6), 75, %s149_s6 }
  0x27   : > { %p151_p4 = scmp.lt.s32.totalorder (%p1140_p6), %s150_s8, 40  ;;  %s145_s24 = scalar_lea.vmem (%p1140_p6), [#allocation2], %s782_s7 }
  0x29   : > { %s1538_s8 = smov (!%p151_p4, %s150_s8), 40 }
  0x2a   : > { %s764_s12 = sshll.u32 %s1538_s8, 3 }
  0x2b   : > { %s154_s18 = ssub.s32 320, %s764_s12 }
  0x2c   : > { %s155_s19 = sshll.u32 %s154_s18, 4 }
  0x2d   : > { %156 = vsyncadd %s1181_s21, %s155_s19  ;;  %p1184_p5 = scmp.ne.s32.totalorder %s764_s12, 0  ;;  %s780_s27 = smul.u32 320, %s1131_s22 }
  0x2e   : > { %s1189_s28 = sshll.u32 %s145_s24, 4  ;;  %s768_s6 = sshll.u32 %s1538_s8, 7  ;;  %s164_s28 = int_to_ptr.vmem [resolvable:$true] %s1189_s28 }
  0x2f   : > { %s159_s5 = scalar_lea.hbm %s1510_s0, %s780_s27  ;;  %s873_s12 = sshrl.u32 %s768_s6, 4 }
  0x30   : > { %s161_s7 = sshll.u32 %s159_s5, 4  ;;  %s882_s29 = scalar_lea.hbm %s1510_s0, 600  ;;  %s1196_s7 = int_to_ptr.hbm [resolvable:$true] %s161_s7 }
  0x31   : > { %s871_s19 = sshra.s32 %s1196_s7, 4  ;;  %s872_s19 = int_to_ptr.hbm [resolvable:$true] %s871_s19 }
  0x32   : > { %s878_s16 = scalar_lea.hbm %s872_s19, %s873_s12 }
  0x33   : > { %p879_p7 = scmp.ne.s32.totalorder %s872_s19, %s878_s16  ;;  %p884_p11 = scmp.lt.s32.totalorder %s882_s29, %s878_s16 }
  0x35   : > { %p880_p9 = pnand %p879_p7, %p1184_p5 }
  0x37   : > { %p881_p10 = pneg %p880_p9 }
  0x39   : > { %p886_p12 = pnand %p884_p11, %p881_p10 }
  0x3b   : > { %889 = shalt.err (!%p886_p12)
}
  0x3c   : > { %s890_s20 = sshra.s32 %s164_s28, 4  ;;  %s1061_s18 = smov [#allocation2]   ;;  %s891_s20 = int_to_ptr.vmem [resolvable:$true] %s890_s20 }
  0x3d   : > { %s897_s27 = scalar_lea.vmem %s891_s20, %s873_s12  ;;  %s901_s5 = scalar_lea.vmem %s1061_s18, 640 }
  0x3e   : > { %p898_p13 = scmp.ne.s32.totalorder %s891_s20, %s897_s27  ;;  %p903_p7 = scmp.lt.s32.totalorder %s901_s5, %s897_s27 }
  0x40   : > { %p899_p0 = pnand %p898_p13, %p1184_p5 }
  0x42   : > { %p900_p4 = pneg %p899_p0 }
  0x44   : > { %p905_p9 = pnand %p903_p7, %p900_p4 }
  0x46   : > { %908 = shalt.err (!%p905_p9)
}
  0x47   : > { %s1062_s30 = smov 128   ;;  %s1063_s16 = smov 8  }
  0x48   : > { %169 = dma.hbm_to_vmem [thread:$0]  (%p1184_p5), %s1196_s7, %s768_s6, %s164_s28, %s1181_s21, %s1062_s30, %s1062_s30, %s1063_s16  }
  0x49 PF: > { %172 = sbr.rel (!%p1140_p6) target bundleno = 111 (0x6f), region = 24  ;;  %s173_s29 = sand.u32 (%p1140_p6), 1, %s1047_s14  }
  0x4a   : > { %s181_s19 = smul.u32 (%p1140_p6), 40, %s1131_s22  ;;  %s1225_s18 = scalar_lea.sflag (%p1140_p6), [#allocation6], %s173_s29 }
  0x4b   : > { %s783_s12 = smul.u32 (%p1140_p6), 320, %s173_s29 }
  0x4c   : > { %s182_s24 = ssub.s32 (%p1140_p6), 75, %s181_s19 }
  0x4d   : > { %p183_p10 = scmp.lt.s32.totalorder (%p1140_p6), %s182_s24, 40  ;;  %s177_s8 = scalar_lea.vmem (%p1140_p6), [#allocation5], %s783_s12 }
  0x4f   : > { %s1540_s24 = smov (!%p183_p10, %s182_s24), 40 }
  0x50   : > { %s769_s20 = sshll.u32 %s1540_s24, 3 }
  0x51   : > { %s186_s27 = ssub.s32 320, %s769_s20 }
  0x52   : > { %s187_s26 = sshll.u32 %s186_s27, 4 }
  0x53   : > { %188 = vsyncadd %s1225_s18, %s187_s26  ;;  %p1228_p6 = scmp.ne.s32.totalorder %s769_s20, 0  ;;  %s781_s21 = smul.u32 320, %s1131_s22 }
  0x54   : > { %s1233_s28 = sshll.u32 %s177_s8, 4  ;;  %s773_s6 = sshll.u32 %s1540_s24, 7  ;;  %s196_s28 = int_to_ptr.vmem [resolvable:$true] %s1233_s28 }
  0x55   : > { %s191_s30 = scalar_lea.hbm %s1511_s1, %s781_s21  ;;  %s912_s19 = sshrl.u32 %s773_s6, 4 }
  0x56   : > { %s193_s16 = sshll.u32 %s191_s30, 4  ;;  %s921_s27 = scalar_lea.hbm %s1511_s1, 600  ;;  %s1240_s16 = int_to_ptr.hbm [resolvable:$true] %s193_s16 }
  0x57   : > { %s910_s29 = sshra.s32 %s1240_s16, 4  ;;  %s911_s29 = int_to_ptr.hbm [resolvable:$true] %s910_s29 }
  0x58   : > { %s917_s12 = scalar_lea.hbm %s911_s29, %s912_s19 }
  0x59   : > { %p918_p5 = scmp.ne.s32.totalorder %s911_s29, %s917_s12  ;;  %p923_p13 = scmp.lt.s32.totalorder %s921_s27, %s917_s12 }
  0x5b   : > { %p919_p11 = pnand %p918_p5, %p1228_p6 }
  0x5d   : > { %p920_p12 = pneg %p919_p11 }
  0x5f   : > { %p925_p0 = pnand %p923_p13, %p920_p12 }
  0x61   : > { %928 = shalt.err (!%p925_p0)
}
  0x62   : > { %s929_s26 = sshra.s32 %s196_s28, 4  ;;  %s1064_s21 = smov [#allocation5]   ;;  %s930_s26 = int_to_ptr.vmem [resolvable:$true] %s929_s26 }
  0x63   : > { %s936_s8 = scalar_lea.vmem %s930_s26, %s912_s19  ;;  %s940_s7 = scalar_lea.vmem %s1064_s21, 640 }
  0x64   : > { %p937_p4 = scmp.ne.s32.totalorder %s930_s26, %s936_s8  ;;  %p942_p10 = scmp.lt.s32.totalorder %s940_s7, %s936_s8 }
  0x66   : > { %p938_p7 = pnand %p937_p4, %p1228_p6 }
  0x68   : > { %p939_p9 = pneg %p938_p7 }
  0x6a   : > { %p944_p5 = pnand %p942_p10, %p939_p9 }
  0x6c   : > { %947 = shalt.err (!%p944_p5)
}
  0x6d   : > { %s1065_s5 = smov 128   ;;  %s1066_s30 = smov 8  }
  0x6e   : > { %201 = dma.hbm_to_vmem [thread:$0]  (%p1228_p6), %s1240_s16, %s773_s6, %s196_s28, %s1225_s18, %s1065_s5, %s1065_s5, %s1066_s30  }
  0x6f PF: > { %p774_p11 = scmp.ge.s32.totalorder %s1059_s17, 1  ;;  %p203_p12 = scmp.lt.s32.totalorder %s1059_s17, 3 }
  0x71   : > { %p204_p13 = pnand %p774_p11, %p203_p12 }
  0x72   : > { %s209_s29 = sand.u32 (!%p204_p13), 1, %s1043_s13  }
  0x73   : > { %207 = sbr.rel (%p204_p13) target bundleno = 221 (0xdd), region = 28  ;;  %s210_s12 = scalar_lea.sflag (!%p204_p13), [#allocation3], %s209_s29 }
  0x74   : > { %s784_s19 = smul.u32 (!%p204_p13), 320, %s209_s29 }
  0x76   : > { %s1265_s22 = scalar_lea.vmem (!%p204_p13), [#allocation2], %s784_s19 }
  0x78   : > { %1014 = dma.done.wait (%p1145_p8), %s210_s12, 5120  }
  0x79   : > { %1016 = vsyncadd (%p1145_p8), %s210_s12, 4294962176  ;;  %s220_s24 = scalar_lea.sflag [#allocation6], %s209_s29  ;;  %s1271_s18 = scalar_lea.vmem [#allocation5], %s784_s19 }
  0x7a   : > { %1018 = dma.done.wait (%p1145_p8), %s220_s24, 5120  }
  0x7b   : > { %1020 = vsyncadd (%p1145_p8), %s220_s24, 4294962176  ;;  %v433_v0 = vlaneseq  ;;  %s432_s23 = smul.u32 320, %s1051_s15  ;;  %v271_v17 = vld [vmem:[%s1265_s22] sm:$0xff]  ;;  %v272_v18 = vld [vmem:[%s1265_s22 + $0x8] sm:$0xff]  ;;  %s247_s25 = sand.u32 1, %s1031_s10  }
  0x7c   : > { %v311_v19 = vld [vmem:[%s1271_s18] sm:$0xff]  ;;  %v312_v20 = vld [vmem:[%s1271_s18 + $0x8] sm:$0xff]  ;;  %v273_v22 = vld [vmem:[%s1265_s22 + $0x10] sm:$0xff]  ;;  %s775_s28 = sshll.u32 %s247_s25, 3  ;;  %s777_s6 = sshll.u32 %s1051_s15, 3 }
  0x7d   : > { %v1277_v1 = vshrl.u32 %v433_v0, 7  ;;  %v1287_v9 = vstv %s432_s23  ;;  %v313_v23 = vld [vmem:[%s1271_s18 + $0x10] sm:$0xff]  ;;  %v351_v25 = vsub.f32 %v271_v17, %v311_v19  ;;  %v352_v26 = vsub.f32 %v272_v18, %v312_v20  ;;  %v274_v27 = vld [vmem:[%s1265_s22 + $0x18] sm:$0xff]  ;;  %v275_v33 = vld [vmem:[%s1265_s22 + $0x20] sm:$0xff]  ;;  %s654_s27 = scalar_lea.hbm %s1512_s2, %s777_s6  ;;  %s249_s26 = scalar_lea.vmem [#allocation7], %s775_s28 }
  0x7e   : > { %v314_v28 = vld [vmem:[%s1271_s18 + $0x18] sm:$0xff]  ;;  %v353_v32 = vsub.f32 %v273_v22, %v313_v23  ;;  %v315_v34 = vld [vmem:[%s1271_s18 + $0x20] sm:$0xff]  ;;  %v276_v40 = vld [vmem:[%s1265_s22 + $0x28] sm:$0xff]  ;;  %s656_s8 = sshll.u32 %s249_s26, 4  ;;  %s658_s21 = sshll.u32 %s654_s27, 4  ;;  %s657_s8 = int_to_ptr.vmem [resolvable:$true] %s656_s8  ;;  %s659_s21 = int_to_ptr.hbm [resolvable:$true] %s658_s21 }
  0x7f   : > { %v467_v2 = vadd.s32 264, %v1277_v1  ;;  %v468_v3 = vadd.s32 272, %v1277_v1  ;;  %v469_v4 = vadd.s32 280, %v1277_v1  ;;  %v470_v5 = vadd.s32 288, %v1277_v1  ;;  %v316_v41 = vld [vmem:[%s1271_s18 + $0x28] sm:$0xff]  ;;  %v277_v46 = vld [vmem:[%s1265_s22 + $0x30] sm:$0xff] }
  0x80   : > { %v471_v6 = vadd.s32 296, %v1277_v1  ;;  %v472_v7 = vadd.s32 304, %v1277_v1  ;;  %v473_v8 = vadd.s32 312, %v1277_v1  ;;  %v435_v21 = vadd.s32 8, %v1277_v1  ;;  %v317_v47 = vld [vmem:[%s1271_s18 + $0x30] sm:$0xff]  ;;  %v278_v54 = vld [vmem:[%s1265_s22 + $0x38] sm:$0xff] }
  0x81   : > { %v1290_v10 = vadd.s32 %v1287_v9, %v467_v2  ;;  %v1293_v11 = vadd.s32 %v1287_v9, %v468_v3  ;;  %v1296_v12 = vadd.s32 %v1287_v9, %v469_v4  ;;  %v1299_v13 = vadd.s32 %v1287_v9, %v470_v5  ;;  %v318_v55 = vld [vmem:[%s1271_s18 + $0x38] sm:$0xff]  ;;  %v279_v61 = vld [vmem:[%s1265_s22 + $0x40] sm:$0xff]  ;;  %v281_v22 = vld [vmem:[%s1265_s22 + $0x50] sm:$0xff]  ;;  %s644_s7 = scalar_lea.sflag [#allocation4], %s247_s25  ;;  %s963_s5 = sshra.s32 %s659_s21, 4  ;;  %s964_s5 = int_to_ptr.hbm [resolvable:$true] %s963_s5 }
  0x82   : > { %v1302_v14 = vadd.s32 %v1287_v9, %v471_v6  ;;  %v1305_v15 = vadd.s32 %v1287_v9, %v472_v7  ;;  %v1308_v16 = vadd.s32 %v1287_v9, %v473_v8  ;;  %v436_v24 = vadd.s32 16, %v1277_v1  ;;  %v319_v62 = vld [vmem:[%s1271_s18 + $0x40] sm:$0xff]  ;;  %v280_v6 = vld [vmem:[%s1265_s22 + $0x48] sm:$0xff]  ;;  %v321_v23 = vld [vmem:[%s1271_s18 + $0x50] sm:$0xff]  ;;  %s965_s15 = scalar_lea.hbm %s964_s5, 8  ;;  %s969_s19 = scalar_lea.hbm %s1512_s2, 16 }
  0x83   : > { %v437_v29 = vadd.s32 24, %v1277_v1  ;;  %v475_v30 = vadd.s32 %v1287_v9, %v1277_v1  ;;  %v476_v31 = vadd.s32 %v1287_v9, %v435_v21  ;;  %v438_v35 = vadd.s32 32, %v1277_v1  ;;  %v320_v7 = vld [vmem:[%s1271_s18 + $0x48] sm:$0xff]  ;;  %p966_p8 = scmp.ne.s32.totalorder %s964_s5, %s965_s15  ;;  %p970_p4 = scmp.lt.s32.totalorder %s964_s5, %s1512_s2 }
  0x84   : > { %v477_v36 = vadd.s32 %v1287_v9, %v436_v24  ;;  %v354_v37 = vsub.f32 %v274_v27, %v314_v28  ;;  %v391_v38 = vmul.f32 %v351_v25, %v351_v25  ;;  %v392_v39 = vmul.f32 %v352_v26, %v352_v26  ;;  %p971_p7 = scmp.lt.s32.totalorder %s969_s19, %s965_s15 }
  0x85   : > { %v439_v42 = vadd.s32 40, %v1277_v1  ;;  %v478_v43 = vadd.s32 %v1287_v9, %v437_v29  ;;  %vm515_vm0 = vcmp.lt.s32.totalorder %v475_v30, 600  ;;  %vm516_vm1 = vcmp.lt.s32.totalorder %v476_v31, 600  ;;  %v282_v30 = vld [vmem:[%s1265_s22 + $0x58] sm:$0xff]  ;;  %p967_p6 = pnand %p966_p8, %p1163_p1 }
  0x86   : > { %v355_v44 = vsub.f32 %v275_v33, %v315_v34  ;;  %v393_v45 = vmul.f32 %v353_v32, %v353_v32  ;;  %v440_v48 = vadd.s32 48, %v1277_v1  ;;  %v479_v49 = vadd.s32 %v1287_v9, %v438_v35  ;;  %v322_v31 = vld [vmem:[%s1271_s18 + $0x58] sm:$0xff]  ;;  %p972_p9 = por %p971_p7, %p970_p4 }
  0x87   : > { %vm517_vm2 = vcmp.lt.s32.totalorder %v477_v36, 600  ;;  %v356_v50 = vsub.f32 %v276_v40, %v316_v41  ;;  %v394_v51 = vmul.f32 %v354_v37, %v354_v37  ;;  %v555_v52 = vsel %vm515_vm0, %v391_v38, 0.0  ;;  %v283_v38 = vld [vmem:[%s1265_s22 + $0x60] sm:$0xff]  ;;  %p968_p0 = pneg %p967_p6 }
  0x88   : > { %v556_v53 = vsel %vm516_vm1, %v392_v39, 0.0  ;;  %v441_v56 = vadd.s32 56, %v1277_v1  ;;  %v480_v57 = vadd.s32 %v1287_v9, %v439_v42  ;;  %vm518_vm3 = vcmp.lt.s32.totalorder %v478_v43, 600  ;;  %v323_v39 = vld [vmem:[%s1271_s18 + $0x60] sm:$0xff] }
  0x89   : > { %v357_v58 = vsub.f32 %v277_v46, %v317_v47  ;;  %v395_v59 = vmul.f32 %v355_v44, %v355_v44  ;;  %v557_v60 = vsel %vm517_vm2, %v393_v45, 0.0  ;;  %v442_v63 = vadd.s32 64, %v1277_v1  ;;  %v284_v46 = vld [vmem:[%s1265_s22 + $0x68] sm:$0xff]  ;;  %p973_p10 = pnand %p972_p9, %p968_p0 }
  0x8a   : > { %v481_v0 = vadd.s32 %v1287_v9, %v440_v48  ;;  %vm519_vm4 = vcmp.lt.s32.totalorder %v479_v49, 600  ;;  %v596_v2 = vadd.f32 %v556_v53, %v555_v52  ;;  %v358_v3 = vsub.f32 %v278_v54, %v318_v55  ;;  %v324_v47 = vld [vmem:[%s1271_s18 + $0x68] sm:$0xff]  ;;  %v285_v54 = vld [vmem:[%s1265_s22 + $0x70] sm:$0xff] }
  0x8b   : > { %v396_v4 = vmul.f32 %v356_v50, %v356_v50  ;;  %v558_v5 = vsel %vm518_vm3, %v394_v51, 0.0  ;;  %v443_v8 = vadd.s32 72, %v1277_v1  ;;  %v482_v17 = vadd.s32 %v1287_v9, %v441_v56  ;;  %v325_v55 = vld [vmem:[%s1271_s18 + $0x70] sm:$0xff] }
  0x8c   : > { %vm520_vm5 = vcmp.lt.s32.totalorder %v480_v57, 600  ;;  %v597_v18 = vadd.f32 %v596_v2, %v557_v60  ;;  %v359_v19 = vsub.f32 %v279_v61, %v319_v62  ;;  %v397_v20 = vmul.f32 %v357_v58, %v357_v58  ;;  %v286_v62 = vld [vmem:[%s1265_s22 + $0x78] sm:$0xff] }
  0x8d   : > { %v559_v21 = vsel %vm519_vm4, %v395_v59, 0.0  ;;  %v444_v24 = vadd.s32 80, %v1277_v1  ;;  %v483_v25 = vadd.s32 %v1287_v9, %v442_v63  ;;  %vm521_vm6 = vcmp.lt.s32.totalorder %v481_v0, 600  ;;  %v326_v63 = vld [vmem:[%s1271_s18 + $0x78] sm:$0xff] }
  0x8e   : > { %v598_v26 = vadd.f32 %v597_v18, %v558_v5  ;;  %v360_v27 = vsub.f32 %v280_v6, %v320_v7  ;;  %v398_v28 = vmul.f32 %v358_v3, %v358_v3  ;;  %v560_v29 = vsel %vm520_vm5, %v396_v4, 0.0  ;;  %v287_v7 = vld [vmem:[%s1265_s22 + $0x80] sm:$0xff] }
  0x8f   : > { %v445_v32 = vadd.s32 88, %v1277_v1  ;;  %v484_v33 = vadd.s32 %v1287_v9, %v443_v8  ;;  %vm522_vm7 = vcmp.lt.s32.totalorder %v482_v17, 600  ;;  %v361_v35 = vsub.f32 %v281_v22, %v321_v23  ;;  %v327_v8 = vld [vmem:[%s1271_s18 + $0x80] sm:$0xff]  ;;  %v288_v23 = vld [vmem:[%s1265_s22 + $0x88] sm:$0xff] }
  0x90   : > { %v599_v34 = vadd.f32 %v598_v26, %v559_v21  ;;  %v399_v36 = vmul.f32 %v359_v19, %v359_v19  ;;  %v561_v37 = vsel %vm521_vm6, %v397_v20, 0.0  ;;  %v446_v40 = vadd.s32 96, %v1277_v1 }
  0x91   : > { %v485_v41 = vadd.s32 %v1287_v9, %v444_v24  ;;  %vm523_vm8 = vcmp.lt.s32.totalorder %v483_v25, 600  ;;  %v362_v43 = vsub.f32 %v282_v30, %v322_v31  ;;  %v400_v44 = vmul.f32 %v360_v27, %v360_v27  ;;  %v328_v24 = vld [vmem:[%s1271_s18 + $0x88] sm:$0xff]  ;;  %v289_v31 = vld [vmem:[%s1265_s22 + $0x90] sm:$0xff] }
  0x92   : > { %v600_v42 = vadd.f32 %v599_v34, %v560_v29  ;;  %v562_v45 = vsel %vm522_vm7, %v398_v28, 0.0  ;;  %v447_v48 = vadd.s32 104, %v1277_v1  ;;  %v486_v49 = vadd.s32 %v1287_v9, %v445_v32  ;;  %v329_v32 = vld [vmem:[%s1271_s18 + $0x90] sm:$0xff] }
  0x93   : > { %vm524_vm9 = vcmp.lt.s32.totalorder %v484_v33, 600  ;;  %v363_v51 = vsub.f32 %v283_v38, %v323_v39  ;;  %v401_v52 = vmul.f32 %v361_v35, %v361_v35  ;;  %v563_v53 = vsel %vm523_vm8, %v399_v36, 0.0  ;;  %v290_v39 = vld [vmem:[%s1265_s22 + $0x98] sm:$0xff] }
  0x94   : > { %v601_v50 = vadd.f32 %v600_v42, %v561_v37  ;;  %v448_v56 = vadd.s32 112, %v1277_v1  ;;  %v487_v57 = vadd.s32 %v1287_v9, %v446_v40  ;;  %vm525_vm10 = vcmp.lt.s32.totalorder %v485_v41, 600  ;;  %v330_v40 = vld [vmem:[%s1271_s18 + $0x98] sm:$0xff] }
  0x95   : > { %v364_v59 = vsub.f32 %v284_v46, %v324_v47  ;;  %v402_v60 = vmul.f32 %v362_v43, %v362_v43  ;;  %v564_v61 = vsel %vm524_vm9, %v400_v44, 0.0  ;;  %v449_v0 = vadd.s32 120, %v1277_v1  ;;  %v291_v47 = vld [vmem:[%s1265_s22 + $0xa0] sm:$0xff] }
  0x96   : > { %v602_v58 = vadd.f32 %v601_v50, %v562_v45  ;;  %v488_v2 = vadd.s32 %v1287_v9, %v447_v48  ;;  %vm526_vm11 = vcmp.lt.s32.totalorder %v486_v49, 600  ;;  %v365_v4 = vsub.f32 %v285_v54, %v325_v55  ;;  %v331_v48 = vld [vmem:[%s1271_s18 + $0xa0] sm:$0xff]  ;;  %v292_v55 = vld [vmem:[%s1265_s22 + $0xa8] sm:$0xff] }
  0x97   : > { %v403_v5 = vmul.f32 %v363_v51, %v363_v51  ;;  %v565_v6 = vsel %vm525_vm10, %v401_v52, 0.0  ;;  %v450_v17 = vadd.s32 128, %v1277_v1  ;;  %v489_v18 = vadd.s32 %v1287_v9, %v448_v56  ;;  %v332_v56 = vld [vmem:[%s1271_s18 + $0xa8] sm:$0xff] }
  0x98   : > { %v603_v3 = vadd.f32 %v602_v58, %v563_v53  ;;  %vm527_vm12 = vcmp.lt.s32.totalorder %v487_v57, 600  ;;  %v366_v20 = vsub.f32 %v286_v62, %v326_v63  ;;  %v404_v21 = vmul.f32 %v364_v59, %v364_v59  ;;  %v293_v63 = vld [vmem:[%s1265_s22 + $0xb0] sm:$0xff] }
  0x99   : > { %v566_v22 = vsel %vm526_vm11, %v402_v60, 0.0  ;;  %v451_v25 = vadd.s32 136, %v1277_v1  ;;  %v490_v26 = vadd.s32 %v1287_v9, %v449_v0  ;;  %vm528_vm13 = vcmp.lt.s32.totalorder %v488_v2, 600  ;;  %v333_v0 = vld [vmem:[%s1271_s18 + $0xb0] sm:$0xff] }
  0x9a   : > { %v604_v19 = vadd.f32 %v603_v3, %v564_v61  ;;  %v367_v28 = vsub.f32 %v287_v7, %v327_v8  ;;  %v405_v29 = vmul.f32 %v365_v4, %v365_v4  ;;  %v567_v30 = vsel %vm527_vm12, %v403_v5, 0.0  ;;  %v294_v8 = vld [vmem:[%s1265_s22 + $0xb8] sm:$0xff] }
  0x9b   : > { %v452_v33 = vadd.s32 144, %v1277_v1  ;;  %v491_v34 = vadd.s32 %v1287_v9, %v450_v17  ;;  %vm529_vm14 = vcmp.lt.s32.totalorder %v489_v18, 600  ;;  %v368_v36 = vsub.f32 %v288_v23, %v328_v24  ;;  %v334_v17 = vld [vmem:[%s1271_s18 + $0xb8] sm:$0xff]  ;;  %v295_v24 = vld [vmem:[%s1265_s22 + $0xc0] sm:$0xff] }
  0x9c   : > { %v605_v27 = vadd.f32 %v604_v19, %v565_v6  ;;  %v406_v37 = vmul.f32 %v366_v20, %v366_v20  ;;  %v568_v38 = vsel %vm528_vm13, %v404_v21, 0.0  ;;  %v453_v41 = vadd.s32 152, %v1277_v1 }
  0x9d   : > { %v492_v42 = vadd.s32 %v1287_v9, %v451_v25  ;;  %vm530_vm15 = vcmp.lt.s32.totalorder %v490_v26, 600  ;;  %v369_v44 = vsub.f32 %v289_v31, %v329_v32  ;;  %v407_v45 = vmul.f32 %v367_v28, %v367_v28  ;;  %v335_v25 = vld [vmem:[%s1271_s18 + $0xc0] sm:$0xff]  ;;  %v296_v32 = vld [vmem:[%s1265_s22 + $0xc8] sm:$0xff] }
  0x9e   : > { %v606_v35 = vadd.f32 %v605_v27, %v566_v22  ;;  %v569_v46 = vsel %vm529_vm14, %v405_v29, 0.0  ;;  %v454_v49 = vadd.s32 160, %v1277_v1  ;;  %v493_v50 = vadd.s32 %v1287_v9, %v452_v33  ;;  %v336_v33 = vld [vmem:[%s1271_s18 + $0xc8] sm:$0xff] }
  0x9f   : > { %vm531_vm0 = vcmp.lt.s32.totalorder %v491_v34, 600  ;;  %v370_v52 = vsub.f32 %v290_v39, %v330_v40  ;;  %v408_v53 = vmul.f32 %v368_v36, %v368_v36  ;;  %v570_v54 = vsel %vm530_vm15, %v406_v37, 0.0  ;;  %v297_v40 = vld [vmem:[%s1265_s22 + $0xd0] sm:$0xff] }
  0xa0   : > { %v607_v43 = vadd.f32 %v606_v35, %v567_v30  ;;  %v455_v57 = vadd.s32 168, %v1277_v1  ;;  %v494_v58 = vadd.s32 %v1287_v9, %v453_v41  ;;  %vm532_vm1 = vcmp.lt.s32.totalorder %v492_v42, 600  ;;  %v337_v41 = vld [vmem:[%s1271_s18 + $0xd0] sm:$0xff] }
  0xa1   : > { %v371_v60 = vsub.f32 %v291_v47, %v331_v48  ;;  %v409_v61 = vmul.f32 %v369_v44, %v369_v44  ;;  %v571_v62 = vsel %vm531_vm0, %v407_v45, 0.0  ;;  %v456_v2 = vadd.s32 176, %v1277_v1  ;;  %v298_v48 = vld [vmem:[%s1265_s22 + $0xd8] sm:$0xff] }
  0xa2   : > { %v608_v51 = vadd.f32 %v607_v43, %v568_v38  ;;  %v495_v3 = vadd.s32 %v1287_v9, %v454_v49  ;;  %vm533_vm2 = vcmp.lt.s32.totalorder %v493_v50, 600  ;;  %v372_v5 = vsub.f32 %v292_v55, %v332_v56  ;;  %v338_v49 = vld [vmem:[%s1271_s18 + $0xd8] sm:$0xff]  ;;  %v299_v56 = vld [vmem:[%s1265_s22 + $0xe0] sm:$0xff] }
  0xa3   : > { %v410_v6 = vmul.f32 %v370_v52, %v370_v52  ;;  %v572_v7 = vsel %vm532_vm1, %v408_v53, 0.0  ;;  %v457_v18 = vadd.s32 184, %v1277_v1  ;;  %v496_v19 = vadd.s32 %v1287_v9, %v455_v57  ;;  %v339_v57 = vld [vmem:[%s1271_s18 + $0xe0] sm:$0xff] }
  0xa4   : > { %v609_v59 = vadd.f32 %v608_v51, %v569_v46  ;;  %vm534_vm3 = vcmp.lt.s32.totalorder %v494_v58, 600  ;;  %v373_v21 = vsub.f32 %v293_v63, %v333_v0  ;;  %v411_v22 = vmul.f32 %v371_v60, %v371_v60  ;;  %v300_v0 = vld [vmem:[%s1265_s22 + $0xe8] sm:$0xff] }
  0xa5   : > { %v573_v23 = vsel %vm533_vm2, %v409_v61, 0.0  ;;  %v458_v26 = vadd.s32 192, %v1277_v1  ;;  %v497_v27 = vadd.s32 %v1287_v9, %v456_v2  ;;  %vm535_vm4 = vcmp.lt.s32.totalorder %v495_v3, 600  ;;  %v340_v2 = vld [vmem:[%s1271_s18 + $0xe8] sm:$0xff] }
  0xa6   : > { %v610_v4 = vadd.f32 %v609_v59, %v570_v54  ;;  %v374_v29 = vsub.f32 %v294_v8, %v334_v17  ;;  %v412_v30 = vmul.f32 %v372_v5, %v372_v5  ;;  %v574_v31 = vsel %vm534_vm3, %v410_v6, 0.0  ;;  %v301_v17 = vld [vmem:[%s1265_s22 + $0xf0] sm:$0xff] }
  0xa7   : > { %v459_v34 = vadd.s32 200, %v1277_v1  ;;  %v498_v35 = vadd.s32 %v1287_v9, %v457_v18  ;;  %vm536_vm5 = vcmp.lt.s32.totalorder %v496_v19, 600  ;;  %v375_v37 = vsub.f32 %v295_v24, %v335_v25  ;;  %v341_v18 = vld [vmem:[%s1271_s18 + $0xf0] sm:$0xff]  ;;  %v302_v25 = vld [vmem:[%s1265_s22 + $0xf8] sm:$0xff] }
  0xa8   : > { %v611_v20 = vadd.f32 %v610_v4, %v571_v62  ;;  %v413_v38 = vmul.f32 %v373_v21, %v373_v21  ;;  %v575_v39 = vsel %vm535_vm4, %v411_v22, 0.0  ;;  %v460_v42 = vadd.s32 208, %v1277_v1 }
  0xa9   : > { %v499_v43 = vadd.s32 %v1287_v9, %v458_v26  ;;  %vm537_vm6 = vcmp.lt.s32.totalorder %v497_v27, 600  ;;  %v376_v45 = vsub.f32 %v296_v32, %v336_v33  ;;  %v414_v46 = vmul.f32 %v374_v29, %v374_v29  ;;  %v342_v26 = vld [vmem:[%s1271_s18 + $0xf8] sm:$0xff]  ;;  %v303_v33 = vld [vmem:[%s1265_s22 + $0x100] sm:$0xff] }
  0xaa   : > { %v612_v28 = vadd.f32 %v611_v20, %v572_v7  ;;  %v576_v47 = vsel %vm536_vm5, %v412_v30, 0.0  ;;  %v461_v50 = vadd.s32 216, %v1277_v1  ;;  %v500_v51 = vadd.s32 %v1287_v9, %v459_v34  ;;  %v343_v34 = vld [vmem:[%s1271_s18 + $0x100] sm:$0xff] }
  0xab   : > { %vm538_vm7 = vcmp.lt.s32.totalorder %v498_v35, 600  ;;  %v377_v53 = vsub.f32 %v297_v40, %v337_v41  ;;  %v415_v54 = vmul.f32 %v375_v37, %v375_v37  ;;  %v577_v55 = vsel %vm537_vm6, %v413_v38, 0.0  ;;  %v304_v41 = vld [vmem:[%s1265_s22 + $0x108] sm:$0xff] }
  0xac   : > { %v613_v36 = vadd.f32 %v612_v28, %v573_v23  ;;  %v462_v58 = vadd.s32 224, %v1277_v1  ;;  %v501_v59 = vadd.s32 %v1287_v9, %v460_v42  ;;  %vm539_vm8 = vcmp.lt.s32.totalorder %v499_v43, 600  ;;  %v344_v42 = vld [vmem:[%s1271_s18 + $0x108] sm:$0xff] }
  0xad   : > { %v378_v61 = vsub.f32 %v298_v48, %v338_v49  ;;  %v416_v62 = vmul.f32 %v376_v45, %v376_v45  ;;  %v578_v63 = vsel %vm538_vm7, %v414_v46, 0.0  ;;  %v463_v3 = vadd.s32 232, %v1277_v1  ;;  %v345_v48 = vld [vmem:[%s1271_s18 + $0x110] sm:$0xff] }
  0xae   : > { %v614_v44 = vadd.f32 %v613_v36, %v574_v31  ;;  %v502_v4 = vadd.s32 %v1287_v9, %v461_v50  ;;  %vm540_vm9 = vcmp.lt.s32.totalorder %v500_v51, 600  ;;  %v379_v6 = vsub.f32 %v299_v56, %v339_v57 }
  0xaf   : > { %v417_v7 = vmul.f32 %v377_v53, %v377_v53  ;;  %v579_v8 = vsel %vm539_vm8, %v415_v54, 0.0  ;;  %v464_v19 = vadd.s32 240, %v1277_v1  ;;  %v503_v20 = vadd.s32 %v1287_v9, %v462_v58  ;;  %v306_v54 = vld [vmem:[%s1265_s22 + $0x118] sm:$0xff] }
  0xb0   : > { %v615_v52 = vadd.f32 %v614_v44, %v575_v39  ;;  %vm541_vm10 = vcmp.lt.s32.totalorder %v501_v59, 600  ;;  %v380_v22 = vsub.f32 %v300_v0, %v340_v2  ;;  %v418_v23 = vmul.f32 %v378_v61, %v378_v61  ;;  %v347_v61 = vld [vmem:[%s1271_s18 + $0x120] sm:$0xff]  ;;  %v308_v2 = vld [vmem:[%s1265_s22 + $0x128] sm:$0xff] }
  0xb1   : > { %v580_v24 = vsel %vm540_vm9, %v416_v62, 0.0  ;;  %v465_v27 = vadd.s32 248, %v1277_v1  ;;  %v504_v28 = vadd.s32 %v1287_v9, %v463_v3  ;;  %vm542_vm11 = vcmp.lt.s32.totalorder %v502_v4, 600  ;;  %v348_v3 = vld [vmem:[%s1271_s18 + $0x128] sm:$0xff] }
  0xb2   : > { %v616_v60 = vadd.f32 %v615_v52, %v576_v47  ;;  %v381_v30 = vsub.f32 %v301_v17, %v341_v18  ;;  %v419_v31 = vmul.f32 %v379_v6, %v379_v6  ;;  %v581_v32 = vsel %vm541_vm10, %v417_v7, 0.0  ;;  %v349_v17 = vld [vmem:[%s1271_s18 + $0x130] sm:$0xff] }
  0xb3   : > { %v466_v35 = vadd.s32 256, %v1277_v1  ;;  %v505_v36 = vadd.s32 %v1287_v9, %v464_v19  ;;  %vm543_vm12 = vcmp.lt.s32.totalorder %v503_v20, 600  ;;  %v382_v38 = vsub.f32 %v302_v25, %v342_v26  ;;  %v305_v1 = vld [vmem:[%s1265_s22 + $0x110] sm:$0xff] }
  0xb4   : > { %v617_v5 = vadd.f32 %v616_v60, %v577_v55  ;;  %v420_v39 = vmul.f32 %v380_v22, %v380_v22  ;;  %v582_v40 = vsel %vm542_vm11, %v418_v23, 0.0  ;;  %v506_v43 = vadd.s32 %v1287_v9, %v465_v27  ;;  %v346_v55 = vld [vmem:[%s1271_s18 + $0x118] sm:$0xff]  ;;  %v307_v60 = vld [vmem:[%s1265_s22 + $0x120] sm:$0xff] }
  0xb5   : > { %vm544_vm13 = vcmp.lt.s32.totalorder %v504_v28, 600  ;;  %v383_v45 = vsub.f32 %v303_v33, %v343_v34  ;;  %v421_v46 = vmul.f32 %v381_v30, %v381_v30  ;;  %v583_v47 = vsel %vm543_vm12, %v419_v31, 0.0  ;;  %v310_v22 = vld [vmem:[%s1265_s22 + $0x138] sm:$0xff] }
  0xb6   : > { %v618_v21 = vadd.f32 %v617_v5, %v578_v63  ;;  %v507_v49 = vadd.s32 %v1287_v9, %v466_v35  ;;  %vm545_vm14 = vcmp.lt.s32.totalorder %v505_v36, 600  ;;  %v384_v51 = vsub.f32 %v304_v41, %v344_v42  ;;  %v350_v23 = vld [vmem:[%s1271_s18 + $0x138] sm:$0xff] }
  0xb7   : > { %v422_v52 = vmul.f32 %v382_v38, %v382_v38  ;;  %v584_v53 = vsel %vm544_vm13, %v420_v39, 0.0  ;;  %vm546_vm15 = vcmp.lt.s32.totalorder %v506_v43, 600  ;;  %v385_v57 = vsub.f32 %v305_v1, %v345_v48 }
  0xb8   : > { %v619_v29 = vadd.f32 %v618_v21, %v579_v8  ;;  %v423_v58 = vmul.f32 %v383_v45, %v383_v45  ;;  %v585_v59 = vsel %vm545_vm14, %v421_v46, 0.0  ;;  %vm547_vm0 = vcmp.lt.s32.totalorder %v507_v49, 600  ;;  %v309_v8 = vld [vmem:[%s1265_s22 + $0x130] sm:$0xff] }
  0xb9   : > { %v386_v62 = vsub.f32 %v306_v54, %v346_v55  ;;  %v424_v63 = vmul.f32 %v384_v51, %v384_v51  ;;  %v586_v0 = vsel %vm546_vm15, %v422_v52, 0.0  ;;  %vm548_vm1 = vcmp.lt.s32.totalorder %v1290_v10, 600 }
  0xba   : > { %v620_v37 = vadd.f32 %v619_v29, %v580_v24  ;;  %v387_v5 = vsub.f32 %v307_v60, %v347_v61  ;;  %v425_v6 = vmul.f32 %v385_v57, %v385_v57  ;;  %v587_v7 = vsel %vm547_vm0, %v423_v58, 0.0 }
  0xbb   : > { %vm549_vm2 = vcmp.lt.s32.totalorder %v1293_v11, 600  ;;  %v388_v19 = vsub.f32 %v308_v2, %v348_v3  ;;  %v426_v20 = vmul.f32 %v386_v62, %v386_v62  ;;  %v588_v21 = vsel %vm548_vm1, %v424_v63, 0.0 }
  0xbc   : > { %v621_v44 = vadd.f32 %v620_v37, %v581_v32  ;;  %vm550_vm3 = vcmp.lt.s32.totalorder %v1296_v12, 600  ;;  %v389_v25 = vsub.f32 %v309_v8, %v349_v17  ;;  %v427_v10 = vmul.f32 %v387_v5, %v387_v5 }
  0xbd   : > { %v589_v26 = vsel %vm549_vm2, %v425_v6, 0.0  ;;  %vm551_vm4 = vcmp.lt.s32.totalorder %v1299_v13, 600  ;;  %v390_v28 = vsub.f32 %v310_v22, %v350_v23  ;;  %v428_v29 = vmul.f32 %v388_v19, %v388_v19 }
  0xbe   : > { %v622_v50 = vadd.f32 %v621_v44, %v582_v40  ;;  %v590_v11 = vsel %vm550_vm3, %v426_v20, 0.0  ;;  %vm552_vm5 = vcmp.lt.s32.totalorder %v1302_v14, 600  ;;  %v429_v31 = vmul.f32 %v389_v25, %v389_v25 }
  0xbf   : > { %v591_v32 = vsel %vm551_vm4, %v427_v10, 0.0  ;;  %vm553_vm6 = vcmp.lt.s32.totalorder %v1305_v15, 600  ;;  %v430_v33 = vmul.f32 %v390_v28, %v390_v28  ;;  %v592_v34 = vsel %vm552_vm5, %v428_v29, 0.0 }
  0xc0   : > { %v623_v56 = vadd.f32 %v622_v50, %v583_v47  ;;  %vm554_vm7 = vcmp.lt.s32.totalorder %v1308_v16, 600  ;;  %v593_v13 = vsel %vm553_vm6, %v429_v31, 0.0 }
  0xc1   : > { %v594_v37 = vsel %vm554_vm7, %v430_v33, 0.0 }
  0xc2   : > { %v624_v9 = vadd.f32 %v623_v56, %v584_v53 }
  0xc4   : > { %v625_v4 = vadd.f32 %v624_v9, %v585_v59 }
  0xc6   : > { %v626_v18 = vadd.f32 %v625_v4, %v586_v0 }
  0xc8   : > { %v627_v24 = vadd.f32 %v626_v18, %v587_v7 }
  0xca   : > { %v628_v27 = vadd.f32 %v627_v24, %v588_v21 }
  0xcc   : > { %v629_v30 = vadd.f32 %v628_v27, %v589_v26 }
  0xce   : > { %v630_v12 = vadd.f32 %v629_v30, %v590_v11 }
  0xd0   : > { %v631_v35 = vadd.f32 %v630_v12, %v591_v32 }
  0xd2   : > { %v632_v36 = vadd.f32 %v631_v35, %v592_v34 }
  0xd4   : > { %v633_v38 = vadd.f32 %v632_v36, %v593_v13 }
  0xd6   : > { %v634_v14 = vadd.f32 %v633_v38, %v594_v37 }
  0xd8   : > { %v641_v15 = vmul.f32 1.3020834e-05, %v634_v14 }
  0xda   : > { %642 = vst [vmem:[%s249_s26] sm:$0xff] %v641_v15 }
  0xdb   : > { %976 = shalt.err (!%p973_p10)
}
  0xdc   : > { %787 = dma.vmem_to_hbm [thread:$0]  (%p1163_p1), %s657_s8, 128, %s659_s21, %s644_s7  }
  0xdd PF: > { %s670_s24 = sand.u32 1, %s1027_s9   ;;  %p790_p5 = pnand %p763_p3, %p1167_p2 }
  0xde   : > { %s671_s18 = scalar_lea.sflag [#allocation4], %s670_s24 }
  0xdf   : > { %p791_p11 = pneg %p790_p5 }
  0xe1   : > { %1022 = dma.done.wait (%p791_p11), %s671_s18, 128  }
  0xe2   : > { %1024 = vsyncadd (%p791_p11), %s671_s18, 4294967168  ;;  %s21_s17 = sadd.s32 1, %s1059_s17   ;;  %s1525_s23 = sld [smem:[#allocation13_spill]] }
  0xe3   : > { %p18_p12 = scmp.ge.s32.totalorder %s21_s17, 4   ;;  %s1526_s3 = sld [smem:[#allocation14_spill]] }
  0xe4   : > { %s1527_s15 = sld [smem:[#allocation11_spill]]  ;;  %s1529_s9 = smov %s1031_s10 }
  0xe5   : > { %s1528_s16 = sld [smem:[#allocation12_spill]]  ;;  %s1530_s10 = smov %s1035_s11 }
  0xe6   : > { %s1532_s12 = smov %s1043_s13  ;;  %s1533_s13 = smov %s1047_s14 }
  0xe7   :  { %20 = sbr.rel (!%p18_p12) target bundleno = 10 (0xa), region = 94 }
  0xe8   : > { %s1531_s11 = smov %s1525_s23 }
  0xe9   : > { %s1534_s14 = smov %s1526_s3 }
  0xec   :  { %677 = vsyncpa [#allocation3], 1 }
  0xed   :  { %679 = vsyncpa [#allocation3 + $0x1], 1 }
  0xee   :  { %680 = vsyncpa [#allocation6], 1 }
  0xef   :  { %682 = vsyncpa [#allocation6 + $0x1], 1 }
  0xf0   :  { %683 = vsyncpa [#allocation4], 1 }
  0xf1   :  { %685 = vsyncpa [#allocation4 + $0x1], 1 }

</bundles_post_ra>
